<compile_context>
chip_gen: v7x
topology: tpu7x:2x2x1
jax: 0.10.0
libtpu: 0.0.40
codegen_flags: <defaults>
</compile_context>

<pallas_src>
import functools
import math

import jax
import jax.numpy as jnp
import numpy as np
from jax.experimental import pallas as pl
from jax.experimental.pallas import tpu as pltpu


def _round_up(a: int, b: int) -> int:
    return (a + b - 1) // b * b


def _cdiv(a: int, b: int) -> int:
    return -(-a // b)


def _ln_kernel_packed(x_ref, ones_ref, scale_ref, shift_ref, o_ref, *, epsilon, seg_size):
    """One (tile_rows, P) block; each physical row holds P//seg_size logical rows."""
    x = x_ref[...].astype(jnp.float32)        # (T, P)
    ones2 = ones_ref[...]                     # (2P, P) bf16, block-diag stacked twice
    scale = scale_ref[...]                    # (1, P) f32, pre-tiled to packed width
    shift = shift_ref[...]                    # (1, P) f32

    def seg_sum(z):
        # Double-bf16 split fused into a single K=2P MXU pass: ~f32-accurate
        # per-segment sums, already broadcast to every lane of the owning segment.
        z_hi = z.astype(jnp.bfloat16)
        z_lo = (z - z_hi.astype(jnp.float32)).astype(jnp.bfloat16)
        zc = jnp.concatenate([z_hi, z_lo], axis=-1)          # (T, 2P)
        return jnp.dot(zc, ones2, preferred_element_type=jnp.float32)

    inv_m = jnp.float32(1.0 / seg_size)
    mean = seg_sum(x) * inv_m                                 # (T, P)
    xc = x - mean
    var = seg_sum(xc * xc) * inv_m                            # two-pass (no cancellation)
    std = jnp.sqrt(var)
    denom = std + jnp.float32(epsilon)
    inv0 = pl.reciprocal(denom, approx=True)                  # EUP, off the VALU slots
    inv = inv0 * (2.0 - denom * inv0)                         # one Newton step
    o_ref[...] = (xc * inv * scale + shift).astype(o_ref.dtype)


def _ln_kernel_plain(x_ref, scale_ref, shift_ref, o_ref, *, epsilon):
    """Un-packed path (M already a multiple of 128, or packing not worthwhile)."""
    x = x_ref[...].astype(jnp.float32)
    mean = jnp.mean(x, axis=-1, keepdims=True)
    xc = x - mean
    var = jnp.mean(xc * xc, axis=-1, keepdims=True)
    std = jnp.sqrt(var)
    denom = std + jnp.float32(epsilon)
    inv0 = pl.reciprocal(denom, approx=True)
    inv = inv0 * (2.0 - denom * inv0)
    o_ref[...] = (xc * inv * scale_ref[...] + shift_ref[...]).astype(o_ref.dtype)


def _device_tuning():
    """(target f32 block bytes, vmem_limit cap) per chip generation."""
    try:
        kind = jax.devices()[0].device_kind.lower()
    except Exception:
        kind = ""
    if ("v5" in kind) or ("v6" in kind):
        return 4 * 1024 * 1024, 96 * 1024 * 1024   # 128 MiB physical VMEM
    return 2 * 1024 * 1024, 48 * 1024 * 1024        # v7x: 64 MiB physical VMEM


def layer_norm(x, scale, shift, epsilon: float = 1e-10):
    """x: (..., M) (e.g. (N, K, M)), scale/shift: (M,). Returns same shape as x."""
    orig_shape = x.shape
    M = orig_shape[-1]
    rows = math.prod(orig_shape[:-1]) if len(orig_shape) > 1 else 1
    x2 = x.reshape(rows, M)

    # Lane packing: num_seg logical rows side by side so the last dim is a dense
    # multiple of 128 lanes (unmasked vst/vld).  Generalized to any M whose lcm with
    # 128 stays small; otherwise fall back to the plain per-row layout.
    if M % 128 == 0:
        num_seg = 1
    else:
        L = math.lcm(M, 128)
        num_seg = (L // M) if L <= 512 else 1
    P = num_seg * M

    target_block_bytes, vmem_cap = _device_tuning()

    # Pad rows only to a small multiple (num_seg * 8).  Typical shapes (rows a
    # multiple of 8*num_seg) incur zero extra HBM copies: no jnp.pad, no output
    # slice; ragged final grid blocks cover non-multiple tile counts.
    rows_padded = _round_up(rows, num_seg * 8)
    if rows_padded != rows:
        x2 = jnp.pad(x2, ((0, rows_padded - rows), (0, 0)))   # zero rows -> y = shift
    packed_rows = rows_padded // num_seg
    xp = x2.reshape(packed_rows, P)                           # free (row-major)

    # Large row tiles (~2-4 MiB f32 working set) amortize the ~0.35us/step grid
    # overhead while keeping double-buffered blocks + f32 temporaries inside VMEM.
    tile_rows = target_block_bytes // (P * 4)
    tile_rows = max(8, min(8192, (tile_rows // 8) * 8))
    if packed_rows >= 16:
        # Keep >= 2 grid steps so the "parallel" axis spans both v7x TensorCores.
        tile_rows = min(tile_rows, _round_up(_cdiv(packed_rows, 2), 8))
    else:
        tile_rows = min(tile_rows, _round_up(packed_rows, 8))
    grid = (pl.cdiv(packed_rows, tile_rows),)

    f32_block_bytes = tile_rows * P * 4
    vmem_limit_bytes = int(min(vmem_cap, max(32 * 1024 * 1024, 16 * f32_block_bytes)))

    # Affine params pre-cast to f32 and pre-tiled to the packed width; constant
    # index_map -> DMA'd once, no per-step astype/broadcast in the kernel.
    scale_p = jnp.tile(scale.astype(jnp.float32).reshape(1, M), (1, num_seg))
    shift_p = jnp.tile(shift.astype(jnp.float32).reshape(1, M), (1, num_seg))

    compiler_params = pltpu.CompilerParams(
        dimension_semantics=("parallel",),
        vmem_limit_bytes=vmem_limit_bytes,
    )

    if num_seg > 1:
        # Block-diagonal segment-ones, vertically stacked twice for the fused hi/lo
        # matmul.  Built once on host; constant index_map so it is DMA'd only once.
        seg = np.arange(P, dtype=np.int64) // M
        ones_np = (seg[:, None] == seg[None, :]).astype(np.float32)
        ones2 = jnp.asarray(np.concatenate([ones_np, ones_np], axis=0),
                            dtype=jnp.bfloat16)               # (2P, P)

        kernel = functools.partial(_ln_kernel_packed, epsilon=float(epsilon), seg_size=M)
        out = pl.pallas_call(
            kernel,
            out_shape=jax.ShapeDtypeStruct((packed_rows, P), x.dtype),
            grid_spec=pltpu.PrefetchScalarGridSpec(
                num_scalar_prefetch=0,
                grid=grid,
                in_specs=[
                    pl.BlockSpec((tile_rows, P), lambda i: (i, 0)),
                    pl.BlockSpec((2 * P, P), lambda i: (0, 0)),
                    pl.BlockSpec((1, P), lambda i: (0, 0)),
                    pl.BlockSpec((1, P), lambda i: (0, 0)),
                ],
                out_specs=pl.BlockSpec((tile_rows, P), lambda i: (i, 0)),
            ),
            compiler_params=compiler_params,
        )(xp, ones2, scale_p, shift_p)
    else:
        kernel = functools.partial(_ln_kernel_plain, epsilon=float(epsilon))
        out = pl.pallas_call(
            kernel,
            out_shape=jax.ShapeDtypeStruct((packed_rows, P), x.dtype),
            grid_spec=pltpu.PrefetchScalarGridSpec(
                num_scalar_prefetch=0,
                grid=grid,
                in_specs=[
                    pl.BlockSpec((tile_rows, P), lambda i: (i, 0)),
                    pl.BlockSpec((1, P), lambda i: (0, 0)),
                    pl.BlockSpec((1, P), lambda i: (0, 0)),
                ],
                out_specs=pl.BlockSpec((tile_rows, P), lambda i: (i, 0)),
            ),
            compiler_params=compiler_params,
        )(xp, scale_p, shift_p)

    out = out.reshape(rows_padded, M)
    if rows_padded != rows:
        out = out[:rows]
    return out.reshape(orig_shape)


def _reference(x, scale, shift, epsilon):
    mean = jnp.mean(x, axis=-1, keepdims=True)
    std = jnp.sqrt(jnp.mean((x - mean) ** 2, axis=-1, keepdims=True))
    return scale * (x - mean) / (std + epsilon) + shift


if __name__ == "__main__":
    key = jax.random.PRNGKey(0)
    kx, ks, kb = jax.random.split(key, 3)

    # Primary shape consistent with the module: (N, K, M) = (2, 8, 32)
    N, K, M = 2, 8, 32
    x = jax.random.normal(kx, (N, K, M), dtype=jnp.float32)
    scale = 1.0 + 0.1 * jax.random.normal(ks, (M,), dtype=jnp.float32)
    shift = 0.1 * jax.random.normal(kb, (M,), dtype=jnp.float32)
    epsilon = 1e-10

    y = jax.block_until_ready(layer_norm(x, scale, shift, epsilon=epsilon))
    y_ref = _reference(x, scale, shift, epsilon)
    assert y.shape == (N, K, M)
    err = float(jnp.max(jnp.abs(y - y_ref)))
    assert jnp.allclose(y, y_ref, atol=5e-5, rtol=1e-5), err

    # Additional shapes covering every code path:
    #   (3, 5, 32)     small row padding + packed path
    #   (2, 4, 256)    un-packed lane-dense path (M % 128 == 0)
    #   (2, 6, 48)     generalized lcm packing (P = 384, num_seg = 8)
    #   (2, 5, 200)    fallback path (no packing, last dim == full array dim)
    #   (4, 1000, 32)  multi-step grid with a ragged final block, zero pad/slice copies
    #   (4, 100, 32)   non-unit-scale data (double-bf16 split accuracy check)
    cases = [
        ((3, 5, 32), 1e-4, False),
        ((2, 4, 256), 5e-5, False),
        ((2, 6, 48), 1e-4, False),
        ((2, 5, 200), 5e-5, False),
        ((4, 1000, 32), 2e-4, False),
        ((4, 100, 32), 5e-4, True),
    ]
    for idx, (shape, atol, use_offset) in enumerate(cases):
        Mi = shape[-1]
        kxi, ksi, kbi = jax.random.split(jax.random.PRNGKey(idx + 1), 3)
        xi = jax.random.normal(kxi, shape, dtype=jnp.float32)
        if use_offset:
            xi = 5.0 + 3.0 * xi
        si = 1.0 + 0.1 * jax.random.normal(ksi, (Mi,), dtype=jnp.float32)
        bi = 0.1 * jax.random.normal(kbi, (Mi,), dtype=jnp.float32)
        yi = jax.block_until_ready(layer_norm(xi, si, bi, epsilon=epsilon))
        yr = _reference(xi, si, bi, epsilon)
        assert yi.shape == shape
        erri = float(jnp.max(jnp.abs(yi - yr)))
        assert jnp.allclose(yi, yr, atol=atol, rtol=1e-5), (shape, erri)

    print("KERNEL_OK")
</pallas_src>

<mosaic_0001>
module attributes {stable_mosaic.version = 11 : i64} {
  func.func @_ln_kernel_packed(%arg0: i32, %arg1: memref<8x128xf32, #tpu.memory_space<vmem>>, %arg2: memref<256x128xbf16, #tpu.memory_space<vmem>>, %arg3: memref<1x128xf32, #tpu.memory_space<vmem>>, %arg4: memref<1x128xf32, #tpu.memory_space<vmem>>, %arg5: memref<8x128xf32, #tpu.memory_space<vmem>>) attributes {dimension_semantics = [#tpu.dimension_semantics<parallel>], iteration_bounds = array<i64: 1>, scalar_prefetch = 0 : i64, scratch_operands = 0 : i64, tpu.core_type = #tpu.core_type<tc>, window_params = [{transform_indices = @transform_0, window_bounds = array<i64: 8, 128>}, {pipeline_mode = #tpu.pipeline_mode<synchronous>, transform_indices = @transform_1, window_bounds = array<i64: 256, 128>}, {pipeline_mode = #tpu.pipeline_mode<synchronous>, transform_indices = @transform_2, window_bounds = array<i64: 1, 128>}, {pipeline_mode = #tpu.pipeline_mode<synchronous>, transform_indices = @transform_3, window_bounds = array<i64: 1, 128>}, {transform_indices = @transform_4, window_bounds = array<i64: 8, 128>}]} {
    %c0 = arith.constant 0 : index
    %c0_0 = arith.constant 0 : index
    %0 = vector.load %arg1[%c0, %c0_0] : memref<8x128xf32, #tpu.memory_space<vmem>>, vector<8x128xf32>
    %c0_1 = arith.constant 0 : index
    %c0_2 = arith.constant 0 : index
    %1 = vector.load %arg2[%c0_1, %c0_2] : memref<256x128xbf16, #tpu.memory_space<vmem>>, vector<256x128xbf16>
    %c0_3 = arith.constant 0 : index
    %c0_4 = arith.constant 0 : index
    %2 = vector.load %arg3[%c0_3, %c0_4] : memref<1x128xf32, #tpu.memory_space<vmem>>, vector<1x128xf32>
    %c0_5 = arith.constant 0 : index
    %c0_6 = arith.constant 0 : index
    %3 = vector.load %arg4[%c0_5, %c0_6] : memref<1x128xf32, #tpu.memory_space<vmem>>, vector<1x128xf32>
    %4 = arith.truncf %0 : vector<8x128xf32> to vector<8x128xbf16>
    %5 = arith.extf %4 : vector<8x128xbf16> to vector<8x128xf32>
    %6 = arith.subf %0, %5 : vector<8x128xf32>
    %7 = arith.truncf %6 : vector<8x128xf32> to vector<8x128xbf16>
    %8 = tpu.concatenate %4, %7 in 1 : vector<8x128xbf16>, vector<8x128xbf16> -> vector<8x256xbf16>
    %cst = arith.constant dense<0.000000e+00> : vector<8x128xf32>
    %9 = tpu.matmul %8, %1, %cst {dimension_numbers = #tpu.dot_dimension_numbers<[1], [0], [0], [1], [0, 0, 1, 1], [], []>} : vector<8x256xbf16>, vector<256x128xbf16>, vector<8x128xf32> -> vector<8x128xf32>
    %cst_7 = arith.constant 3.125000e-02 : f32
    %10 = vector.broadcast %cst_7 : f32 to vector<8x128xf32>
    %11 = arith.mulf %9, %10 : vector<8x128xf32>
    %12 = arith.subf %0, %11 : vector<8x128xf32>
    %13 = arith.mulf %12, %12 : vector<8x128xf32>
    %14 = arith.truncf %13 : vector<8x128xf32> to vector<8x128xbf16>
    %15 = arith.extf %14 : vector<8x128xbf16> to vector<8x128xf32>
    %16 = arith.subf %13, %15 : vector<8x128xf32>
    %17 = arith.truncf %16 : vector<8x128xf32> to vector<8x128xbf16>
    %18 = tpu.concatenate %14, %17 in 1 : vector<8x128xbf16>, vector<8x128xbf16> -> vector<8x256xbf16>
    %cst_8 = arith.constant dense<0.000000e+00> : vector<8x128xf32>
    %19 = tpu.matmul %18, %1, %cst_8 {dimension_numbers = #tpu.dot_dimension_numbers<[1], [0], [0], [1], [0, 0, 1, 1], [], []>} : vector<8x256xbf16>, vector<256x128xbf16>, vector<8x128xf32> -> vector<8x128xf32>
    %cst_9 = arith.constant 3.125000e-02 : f32
    %20 = vector.broadcast %cst_9 : f32 to vector<8x128xf32>
    %21 = arith.mulf %19, %20 : vector<8x128xf32>
    %22 = math.sqrt %21 : vector<8x128xf32>
    %cst_10 = arith.constant 1.000000e-10 : f32
    %23 = vector.broadcast %cst_10 : f32 to vector<8x128xf32>
    %24 = arith.addf %22, %23 : vector<8x128xf32>
    %25 = tpu.reciprocal %24 {approx = true} : vector<8x128xf32> -> vector<8x128xf32>
    %26 = arith.mulf %24, %25 : vector<8x128xf32>
    %cst_11 = arith.constant 2.000000e+00 : f32
    %27 = vector.broadcast %cst_11 : f32 to vector<8x128xf32>
    %28 = arith.subf %27, %26 : vector<8x128xf32>
    %29 = arith.mulf %25, %28 : vector<8x128xf32>
    %30 = arith.mulf %12, %29 : vector<8x128xf32>
    %31 = vector.broadcast %2 : vector<1x128xf32> to vector<8x128xf32>
    %32 = arith.mulf %30, %31 : vector<8x128xf32>
    %33 = vector.broadcast %3 : vector<1x128xf32> to vector<8x128xf32>
    %34 = arith.addf %32, %33 : vector<8x128xf32>
    %c0_12 = arith.constant 0 : index
    %c0_13 = arith.constant 0 : index
    %35 = vector.load %arg5[%c0_12, %c0_13] : memref<8x128xf32, #tpu.memory_space<vmem>>, vector<8x128xf32>
    tpu.vector_store %arg5[%c0_12, %c0_13], %34 {strides = array<i32>} : memref<8x128xf32, #tpu.memory_space<vmem>>, vector<8x128xf32>,
    return
  }
  func.func @transform_0(%arg0: i32) -> (i32, i32) {
    %c0_i32 = arith.constant 0 : i32
    %c0_i32_0 = arith.constant 0 : i32
    return %arg0, %c0_i32 : i32, i32
  }
  func.func @transform_1(%arg0: i32) -> (i32, i32) {
    %c0_i32 = arith.constant 0 : i32
    %c0_i32_0 = arith.constant 0 : i32
    %c0_i32_1 = arith.constant 0 : i32
    return %c0_i32, %c0_i32_0 : i32, i32
  }
  func.func @transform_2(%arg0: i32) -> (i32, i32) {
    %c0_i32 = arith.constant 0 : i32
    %c0_i32_0 = arith.constant 0 : i32
    %c0_i32_1 = arith.constant 0 : i32
    return %c0_i32, %c0_i32_0 : i32, i32
  }
  func.func @transform_3(%arg0: i32) -> (i32, i32) {
    %c0_i32 = arith.constant 0 : i32
    %c0_i32_0 = arith.constant 0 : i32
    %c0_i32_1 = arith.constant 0 : i32
    return %c0_i32, %c0_i32_0 : i32, i32
  }
  func.func @transform_4(%arg0: i32) -> (i32, i32) {
    %c0_i32 = arith.constant 0 : i32
    %c0_i32_0 = arith.constant 0 : i32
    return %arg0, %c0_i32 : i32, i32
  }
}

</mosaic_0001>

<bundles_post_ra>
// kernel: tpu_custom_call.1
= control target key start
LH: loop header
LB: loop body
LE: loop exit
PB: predicated region body
PF: predicated region fallthrough
CT: control target
= control target key end

     0   :  { %9 = vsyncpa [#allocation3], 0  ;;  %s550_s0 = inlined_call_operand.hbm [shape: f32[8,128], index: 0, kind: input, shape index: {}]   ;;  %s551_s1 = inlined_call_operand.hbm [shape: bf16[256,128], index: 1, kind: input, shape index: {}]   ;;  %s552_s2 = inlined_call_operand.vmem [shape: f32[1,128], index: 2, kind: input, shape index: {}]   ;;  %s553_s3 = inlined_call_operand.vmem [shape: f32[1,128], index: 3, kind: input, shape index: {}]   ;;  %s554_s4 = inlined_call_operand.hbm [shape: f32[8,128], index: 4, kind: output, shape index: {}]  }
   0x1   :  { %10 = vsyncpa [#allocation6], 0 }
   0x2   :  { %11 = vsyncpa [#allocation4], 0  ;;  %s471_s15 = smov [#allocation2]   ;;  %s472_s17 = smov [#allocation5]  }
   0x3   :  { %s18_s16 = sshll.u32 %s471_s15, 4  ;;  %s27_s18 = sshll.u32 %s472_s17, 4  ;;  %s19_s16 = int_to_ptr.vmem [resolvable:$true] %s18_s16  ;;  %s501_s18 = int_to_ptr.vmem [resolvable:$true] %s27_s18 }
   0x4   :  { %s399_s21 = scalar_lea.hbm %s550_s0, 128 }
   0x5   :  { %p400_p0 = scmp.ne.s32.totalorder %s550_s0, %s399_s21  ;;  %p403_p1 = scmp.lt.u32.totalorder %s399_s21, %s550_s0 }
   0x7   :  { %p405_p2 = pnand %p403_p1, %p400_p0 }
   0x9   :  { %408 = shalt.err (!%p405_p2)
}
   0xa   :  { %s409_s26 = scalar_lea.vmem %s19_s16, 128  ;;  %p414_p4 = scmp.lt.s32.totalorder %s19_s16, %s19_s16 }
   0xb   :  { %p410_p3 = scmp.ne.s32.totalorder %s19_s16, %s409_s26  ;;  %p415_p5 = scmp.lt.s32.totalorder %s409_s26, %s409_s26 }
   0xd   :  { %p416_p6 = por %p415_p5, %p414_p4 }
   0xf   :  { %p417_p7 = pnand %p416_p6, %p410_p3 }
  0x11   :  { %420 = shalt.err (!%p417_p7)
}
  0x12   :  { %21 = dma.hbm_to_vmem [thread:$0]  %s550_s0, 128, %s19_s16, [#allocation3]  }
  0x13   :  { %s421_s5 = scalar_lea.hbm %s551_s1, 2048 }
  0x14   :  { %p422_p8 = scmp.ne.s32.totalorder %s551_s1, %s421_s5  ;;  %p425_p9 = scmp.lt.u32.totalorder %s421_s5, %s551_s1 }
  0x16   :  { %p427_p10 = pnand %p425_p9, %p422_p8 }
  0x18   :  { %430 = shalt.err (!%p427_p10)
}
  0x19   :  { %s431_s10 = scalar_lea.vmem %s501_s18, 2048  ;;  %p436_p12 = scmp.lt.s32.totalorder %s501_s18, %s501_s18 }
  0x1a   :  { %p432_p11 = scmp.ne.s32.totalorder %s501_s18, %s431_s10  ;;  %p437_p13 = scmp.lt.s32.totalorder %s431_s10, %s431_s10 }
  0x1c   :  { %p438_p0 = por %p437_p13, %p436_p12 }
  0x1e   :  { %p439_p1 = pnand %p438_p0, %p432_p11 }
  0x20   :  { %442 = shalt.err (!%p439_p1)
}
  0x21   :  { %s473_s0 = smov 64   ;;  %s474_s11 = smov 4  }
  0x22   :  { %33 = dma.hbm_to_vmem [thread:$0]  %s551_s1, 2048, %s501_s18, [#allocation6], %s473_s0, %s473_s0, %s474_s11  }
  0x23   :  { %465 = dma.done.wait [#allocation3], 128  }
  0x24   :  { %466 = vsyncadd [#allocation3], 4294967168 }
  0x25   :  { %467 = dma.done.wait [#allocation6], 2048  }
  0x26   :  { %468 = vsyncadd [#allocation6], 4294965248  ;;  %v379_v0 = vld [vmem:[#allocation5 + $0x40] sm:$0xff]   ;;  %v381_v2 = vld [vmem:[#allocation5 + $0x48] sm:$0xff]   ;;  %s475_s17 = smov [#allocation7]  }
  0x27   :  { %v380_v1 = vld [vmem:[#allocation5] sm:$0xff]   ;;  %330 = vmatprep.subr.bf16.mxu0 %v379_v0  ;;  %352 = vmatprep.subr.bf16.mxu1 %v379_v0  ;;  %v382_v3 = vld [vmem:[#allocation5 + $0x8] sm:$0xff]   ;;  %v383_v4 = vld [vmem:[#allocation5 + $0x50] sm:$0xff]   ;;  %s302_s18 = sshll.u32 %s475_s17, 4  ;;  %s303_s18 = int_to_ptr.vmem [resolvable:$true] %s302_s18 }
  0x28   :  { %331 = vmatpush3.bf16.msra.mxu0 %v380_v1  ;;  %353 = vmatpush3.bf16.msra.mxu1 %v380_v1  ;;  %v384_v5 = vld [vmem:[#allocation5 + $0x10] sm:$0xff]   ;;  %v385_v6 = vld [vmem:[#allocation5 + $0x58] sm:$0xff]   ;;  %v387_v8 = vld [vmem:[#allocation5 + $0x60] sm:$0xff]   ;;  %s443_s19 = scalar_lea.vmem %s303_s18, 128  ;;  %p448_p3 = scmp.lt.s32.totalorder %s303_s18, %s303_s18 }
  0x29   :  { %332 = vmatprep.subr.bf16.mxu0 %v381_v2  ;;  %354 = vmatprep.subr.bf16.mxu1 %v381_v2  ;;  %v386_v7 = vld [vmem:[#allocation5 + $0x18] sm:$0xff]   ;;  %v388_v9 = vld [vmem:[#allocation5 + $0x20] sm:$0xff]   ;;  %v389_v10 = vld [vmem:[#allocation5 + $0x68] sm:$0xff]   ;;  %p444_p2 = scmp.ne.s32.totalorder %s303_s18, %s443_s19  ;;  %p449_p4 = scmp.lt.s32.totalorder %s443_s19, %s443_s19 }
  0x2a   :  { %v45_v11 = vld [vmem:[#allocation2] sm:$0xff]  ;;  %v390_v13 = vld [vmem:[#allocation5 + $0x28] sm:$0xff]   ;;  %v391_v15 = vld [vmem:[#allocation5 + $0x70] sm:$0xff]  }
  0x2b   :  { %v80_v12 = vpack.c.bf16 %v45_v11, %v45_v11  ;;  %v392_v17 = vld [vmem:[#allocation5 + $0x30] sm:$0xff]   ;;  %v393_v19 = vld [vmem:[#allocation5 + $0x78] sm:$0xff]   ;;  %p450_p5 = por %p449_p4, %p448_p3 }
  0x2c   :  { %333 = vmatpush3.bf16.msra.mxu0 %v382_v3  ;;  %355 = vmatpush3.bf16.msra.mxu1 %v382_v3  ;;  %v394_v20 = vld [vmem:[#allocation5 + $0x38] sm:$0xff]  }
  0x2d   :  { %334 = vmatprep.subr.bf16.mxu0 %v383_v4  ;;  %356 = vmatprep.subr.bf16.mxu1 %v383_v4  ;;  %v81_v14 = vunpack.c.l.bf16 %v80_v12  ;;  %v328_v49 = vld [vmem:[%s552_s2] ss:$0 sm:$0xff]  ;;  %p451_p6 = pnand %p450_p5, %p444_p2 }
  0x2e   :  { %v329_v51 = vld [vmem:[%s553_s3] ss:$0 sm:$0xff] }
  0x2f   :  { %v82_v16 = vsub.f32 %v45_v11, %v81_v14 }
  0x30   :  { %335 = vmatpush3.bf16.msra.mxu0 %v384_v5  ;;  %357 = vmatpush3.bf16.msra.mxu1 %v384_v5 }
  0x31   :  { %336 = vmatprep.subr.bf16.mxu0 %v385_v6  ;;  %358 = vmatprep.subr.bf16.mxu1 %v385_v6  ;;  %v83_v18 = vpack.c.bf16 %v82_v16, %v82_v16 }
  0x33   :  { %212 = vmatprep.mubr.bf16.mxu0 %v83_v18 }
  0x34   :  { %337 = vmatpush3.bf16.msra.mxu0 %v386_v7  ;;  %359 = vmatpush3.bf16.msra.mxu1 %v386_v7 }
  0x35   :  { %338 = vmatprep.subr.bf16.mxu0 %v387_v8  ;;  %360 = vmatprep.subr.bf16.mxu1 %v387_v8 }
  0x38   :  { %339 = vmatpush3.bf16.msra.mxu0 %v388_v9  ;;  %361 = vmatpush3.bf16.msra.mxu1 %v388_v9 }
  0x39   :  { %340 = vmatprep.subr.bf16.mxu0 %v389_v10  ;;  %362 = vmatprep.subr.bf16.mxu1 %v389_v10 }
  0x3c   :  { %341 = vmatpush3.bf16.msra.mxu0 %v390_v13  ;;  %363 = vmatpush3.bf16.msra.mxu1 %v390_v13 }
  0x3d   :  { %342 = vmatprep.subr.bf16.mxu0 %v391_v15  ;;  %364 = vmatprep.subr.bf16.mxu1 %v391_v15 }
  0x40   :  { %343 = vmatpush3.bf16.msra.mxu0 %v392_v17  ;;  %365 = vmatpush3.bf16.msra.mxu1 %v392_v17 }
  0x41   :  { %344 = vmatprep.subr.bf16.mxu0 %v393_v19  ;;  %366 = vmatprep.subr.bf16.mxu1 %v393_v19 }
  0x44   :  { %345 = vmatpush3.bf16.msra.mxu0 %v394_v20  ;;  %367 = vmatpush3.bf16.msra.mxu1 %v394_v20 }
  0x47   :  { %213 = vmatmul.mubr.bf16.vlgmr.msra.gmra.mrb[0].mxu0 %v80_v12 }
 0x11a   :  { %v346_v21 = vpop.f32.mrb[0].mxu0 }
 0x11b   :  { %v347_v22 = vpop.f32.mrb[1].mxu0 }
 0x11c   :  { %v348_v23 = vadd.f32 %v347_v22, %v346_v21  ;;  %v349_v24 = vpop.f32.mrb[2].mxu0 }
 0x11d   :  { %v350_v25 = vpop.f32.mrb[3].mxu0 }
 0x11e   :  { %v220_v26 = vmul.f32 0.03125, %v348_v23 }
 0x120   :  { %v221_v27 = vsub.f32 %v45_v11, %v220_v26 }
 0x122   :  { %v222_v28 = vmul.f32 %v221_v27, %v221_v27 }
 0x124   :  { %v223_v29 = vpack.c.bf16 %v222_v28, %v222_v28 }
 0x126   :  { %v224_v30 = vunpack.c.l.bf16 %v223_v29 }
 0x128   :  { %v225_v31 = vsub.f32 %v222_v28, %v224_v30 }
 0x12a   :  { %v226_v32 = vpack.c.bf16 %v225_v31, %v225_v31 }
 0x12c   :  { %259 = vmatprep.mubr.bf16.mxu1 %v226_v32 }
 0x12d   :  { %260 = vmatmul.mubr.bf16.vlgmr.msra.gmra.mrb[0].mxu1 %v223_v29 }
 0x200   :  { %v368_v33 = vpop.f32.mrb[0].mxu1 }
 0x201   :  { %v369_v34 = vpop.f32.mrb[1].mxu1 }
 0x202   :  { %v370_v35 = vadd.f32 %v369_v34, %v368_v33  ;;  %v371_v36 = vpop.f32.mrb[2].mxu1 }
 0x203   :  { %v372_v37 = vpop.f32.mrb[3].mxu1 }
 0x204   :  { %v267_v38 = vmul.f32 0.03125, %v370_v35 }
 0x206   :  { %395 = vrsqrt.f32 %v267_v38  ;;  %vm270_vm0 = vcmp.eq.f32.partialorder %v267_v38, inf  ;;  %v273_v41 = vand.u32 2147483648, %v267_v38  ;;  %vm272_vm1 = vcmp.eq.f32.partialorder %v267_v38, 0.0 }
 0x210   :  { %v396_v39 = vpop.eup %395 }
 0x211   :  { %v269_v40 = vmul.f32 %v396_v39, %v267_v38 }
 0x213   :  { %v271_v42 = vsel %vm270_vm0, %v267_v38, %v269_v40 }
 0x214   :  { %v274_v43 = vsel %vm272_vm1, %v273_v41, %v271_v42 }
 0x215   :  { %v275_v44 = vadd.f32 1e-10, %v274_v43 }
 0x217   :  { %397 = vrcp.f32 %v275_v44 }
 0x221   :  { %v398_v45 = vpop.eup %397 }
 0x222   :  { %v277_v46 = vmul.f32 %v398_v45, %v275_v44 }
 0x224   :  { %v278_v47 = vsub.f32 2.0, %v277_v46 }
 0x226   :  { %v279_v48 = vmul.f32 %v398_v45, %v278_v47 }
 0x228   :  { %v280_v50 = vmul.f32 %v279_v48, %v221_v27 }
 0x22a   :  { %v287_v52 = vmul.f32 %v328_v49, %v280_v50 }
 0x22c   :  { %v294_v53 = vadd.f32 %v329_v51, %v287_v52 }
 0x22e   :  { %295 = vst [vmem:[#allocation7] sm:$0xff] %v294_v53 }
 0x22f   :  { %454 = shalt.err (!%p451_p6)
}
 0x230   :  { %s455_s21 = scalar_lea.hbm %s554_s4, 128 }
 0x231   :  { %p456_p7 = scmp.ne.s32.totalorder %s554_s4, %s455_s21  ;;  %p459_p8 = scmp.lt.u32.totalorder %s455_s21, %s554_s4 }
 0x233   :  { %p461_p9 = pnand %p459_p8, %p456_p7 }
 0x235   :  { %464 = shalt.err (!%p461_p9)
}
 0x236   :  { %305 = dma.vmem_to_hbm [thread:$0]  %s303_s18, 128, %s554_s4, [#allocation4]  }
 0x237   :  { %469 = dma.done.wait [#allocation4], 128  }
 0x238   :  { %470 = vsyncadd [#allocation4], 4294967168 }
 0x239   :  { %309 = vsyncpa [#allocation3], 1 }
 0x23a   :  { %310 = vsyncpa [#allocation6], 1 }
 0x23b   :  { %311 = vsyncpa [#allocation4], 1 }

</bundles_post_ra>
